<compile_context>
chip_gen: v7x
topology: tpu7x:2x2x1
jax: 0.10.0
libtpu: 0.0.40
codegen_flags: <defaults>
</compile_context>

<pallas_src>
import jax
import jax.numpy as jnp
from jax import lax
from jax.experimental import pallas as pl
from jax.experimental.pallas import tpu as pltpu

EPS = 1e-5


def conv_bn_tanh_kernel(x_ref, p_ref, o_ref):
    # x_ref: (1, P)        flattened input pixels (C_in == 1)
    # p_ref: (C_out, 3)    packed per-channel params: [w, gamma, beta]
    # o_ref: (C_out, P)
    x = x_ref[...]                      # (1, P)
    params = p_ref[...]                 # (C_out, 3)
    w_col = params[:, 0:1]              # (C_out, 1) conv weight (1x1, C_in=1)
    gamma = params[:, 1:2]              # (C_out, 1) BN weight
    beta = params[:, 2:3]               # (C_out, 1) BN bias

    # 1x1 conv with C_in == 1: per-channel scale, VPU broadcast multiply.
    # (Conv bias omitted: it cancels exactly under training-mode BN centering.)
    y = w_col * x                       # (C_out, P) via sublane/lane broadcast

    # BatchNorm2d (training-mode forward): per-channel batch statistics over
    # the N*H*W pixels, biased variance, eps inside the rsqrt.
    inv_p = 1.0 / y.shape[1]            # compile-time constant 1/P
    mean = jnp.sum(y, axis=1, keepdims=True) * inv_p          # (C_out, 1)
    centered = y - mean
    var = jnp.sum(centered * centered, axis=1, keepdims=True) * inv_p
    scale = gamma * lax.rsqrt(var + EPS)                       # (C_out, 1)
    y_bn = centered * scale + beta                             # (C_out, P)

    o_ref[...] = jnp.tanh(y_bn)


def conv_bn_tanh(x_nchw, w, b, gamma, beta):
    """x_nchw: (N, C_in, H, W); w: (C_out, C_in, 1, 1); b/gamma/beta: (C_out,).

    Note: `b` (the conv bias) is accepted for interface fidelity but is NOT
    passed to the kernel — training-mode BatchNorm subtracts the per-channel
    mean, so the bias cancels algebraically and the output is identical.
    """
    N, C_in, H, W = x_nchw.shape
    C_out = w.shape[0]
    # The flat reshape below is only exact when a single row of channels maps
    # to a single row of pixels.
    assert N == 1 and C_in == 1, "fused 1x1-conv path assumes N == 1, C_in == 1"
    P = N * H * W

    x_flat = x_nchw.astype(jnp.float32).reshape(C_in, P)            # (1, P)
    w_col = w.astype(jnp.float32).reshape(C_out, C_in)              # (C_out, 1)
    del b  # cancels under training-mode BN centering
    params = jnp.concatenate(
        [w_col,
         gamma.astype(jnp.float32).reshape(C_out, 1),
         beta.astype(jnp.float32).reshape(C_out, 1)],
        axis=1,
    )                                                                # (C_out, 3)

    full = lambda shape: pl.BlockSpec(shape, lambda: tuple(0 for _ in shape))

    cost = pl.CostEstimate(
        flops=5 * C_out * P,            # scale + center + square + fma (approx)
        transcendentals=C_out * P + C_out,   # tanh per element + rsqrt per ch
        bytes_accessed=4 * (C_in * P + C_out * 3 + C_out * P),
    )

    out_flat = pl.pallas_call(
        conv_bn_tanh_kernel,
        out_shape=jax.ShapeDtypeStruct((C_out, P), jnp.float32),
        in_specs=[
            full((C_in, P)),
            full((C_out, 3)),
        ],
        out_specs=full((C_out, P)),
        cost_estimate=cost,
    )(x_flat, params)

    return out_flat.reshape(C_out, N, H, W).transpose(1, 0, 2, 3)  # NCHW


if __name__ == "__main__":
    key = jax.random.PRNGKey(0)
    kx, kw, kb = jax.random.split(key, 3)

    # Input consistent with the module: (1, 1, 32, 32)
    x = jax.random.normal(kx, (1, 1, 32, 32), dtype=jnp.float32)

    # Deterministic parameter init (shapes from Conv2d(1, 8, 1) + BatchNorm2d(8))
    C_in, C_out = 1, 8
    bound = 1.0 / (C_in * 1 * 1) ** 0.5
    conv_w = jax.random.uniform(kw, (C_out, C_in, 1, 1), jnp.float32, -bound, bound)
    conv_b = jax.random.uniform(kb, (C_out,), jnp.float32, -bound, bound)
    bn_gamma = jnp.ones((C_out,), jnp.float32)   # BatchNorm2d default weight
    bn_beta = jnp.zeros((C_out,), jnp.float32)   # BatchNorm2d default bias

    out = conv_bn_tanh(x, conv_w, conv_b, bn_gamma, bn_beta)
    jax.block_until_ready(out)

    assert out.shape == (1, 8, 32, 32), out.shape
    assert bool(jnp.all(jnp.isfinite(out)))
    assert bool(jnp.all(jnp.abs(out) <= 1.0))    # tanh range sanity check
    print("KERNEL_OK")
</pallas_src>

<mosaic_0001>
module attributes {stable_mosaic.version = 11 : i64} {
  func.func @conv_bn_tanh_kernel(%arg0: memref<1x1024xf32, #tpu.memory_space<vmem>>, %arg1: memref<8x3xf32, #tpu.memory_space<vmem>>, %arg2: memref<8x1024xf32, #tpu.memory_space<vmem>>) attributes {dimension_semantics = [], scalar_prefetch = 0 : i64, scratch_operands = 0 : i64, tpu.core_type = #tpu.core_type<tc>} {
    %c0 = arith.constant 0 : index
    %c0_0 = arith.constant 0 : index
    %0 = vector.load %arg0[%c0, %c0_0] : memref<1x1024xf32, #tpu.memory_space<vmem>>, vector<1x1024xf32>
    %c0_1 = arith.constant 0 : index
    %c0_2 = arith.constant 0 : index
    %1 = vector.load %arg1[%c0_1, %c0_2] : memref<8x3xf32, #tpu.memory_space<vmem>>, vector<8x3xf32>
    %2 = vector.extract_strided_slice %1 {offsets = [0, 0], sizes = [8, 1], strides = [1, 1]} : vector<8x3xf32> to vector<8x1xf32>
    %3 = vector.extract_strided_slice %1 {offsets = [0, 1], sizes = [8, 1], strides = [1, 1]} : vector<8x3xf32> to vector<8x1xf32>
    %4 = vector.extract_strided_slice %1 {offsets = [0, 2], sizes = [8, 1], strides = [1, 1]} : vector<8x3xf32> to vector<8x1xf32>
    %5 = vector.broadcast %2 : vector<8x1xf32> to vector<8x1024xf32>
    %6 = vector.broadcast %0 : vector<1x1024xf32> to vector<8x1024xf32>
    %7 = arith.mulf %5, %6 : vector<8x1024xf32>
    %cst = arith.constant dense<0.000000e+00> : vector<8xf32>
    %8 = vector.multi_reduction <add>, %7, %cst [1] : vector<8x1024xf32> to vector<8xf32>
    %9 = vector.shape_cast %8 : vector<8xf32> to vector<8x1xf32>
    %cst_3 = arith.constant 9.765625E-4 : f32
    %10 = vector.broadcast %cst_3 : f32 to vector<8x1xf32>
    %11 = arith.mulf %9, %10 : vector<8x1xf32>
    %12 = vector.broadcast %11 : vector<8x1xf32> to vector<8x1024xf32>
    %13 = arith.subf %7, %12 : vector<8x1024xf32>
    %14 = arith.mulf %13, %13 : vector<8x1024xf32>
    %cst_4 = arith.constant dense<0.000000e+00> : vector<8xf32>
    %15 = vector.multi_reduction <add>, %14, %cst_4 [1] : vector<8x1024xf32> to vector<8xf32>
    %16 = vector.shape_cast %15 : vector<8xf32> to vector<8x1xf32>
    %cst_5 = arith.constant 9.765625E-4 : f32
    %17 = vector.broadcast %cst_5 : f32 to vector<8x1xf32>
    %18 = arith.mulf %16, %17 : vector<8x1xf32>
    %cst_6 = arith.constant 9.99999974E-6 : f32
    %19 = vector.broadcast %cst_6 : f32 to vector<8x1xf32>
    %20 = arith.addf %18, %19 : vector<8x1xf32>
    %21 = math.rsqrt %20 : vector<8x1xf32>
    %22 = arith.mulf %3, %21 : vector<8x1xf32>
    %23 = vector.broadcast %22 : vector<8x1xf32> to vector<8x1024xf32>
    %24 = arith.mulf %13, %23 : vector<8x1024xf32>
    %25 = vector.broadcast %4 : vector<8x1xf32> to vector<8x1024xf32>
    %26 = arith.addf %24, %25 : vector<8x1024xf32>
    %27 = math.tanh %26 : vector<8x1024xf32>
    %c0_7 = arith.constant 0 : index
    %c0_8 = arith.constant 0 : index
    %28 = vector.load %arg2[%c0_7, %c0_8] : memref<8x1024xf32, #tpu.memory_space<vmem>>, vector<8x1024xf32>
    tpu.vector_store %arg2[%c0_7, %c0_8], %27 {strides = array<i32>} : memref<8x1024xf32, #tpu.memory_space<vmem>>, vector<8x1024xf32>,
    return
  }
}

</mosaic_0001>

<bundles_post_ra>
// kernel: tpu_custom_call.1
= control target key start
LH: loop header
LB: loop body
LE: loop exit
PB: predicated region body
PF: predicated region fallthrough
CT: control target
= control target key end

     0   :  { %s254_s0 = inlined_call_operand.vmem [shape: f32[1,1024], index: 0, kind: input, shape index: {}]   ;;  %s255_s1 = inlined_call_operand.vmem [shape: f32[8,3], index: 1, kind: input, shape index: {}]   ;;  %s256_s2 = inlined_call_operand.hbm [shape: f32[8,1024], index: 2, kind: output, shape index: {}]  }
   0x1   :  { %v234_v0 = vld [vmem:[%s255_s1] sm:$0xff] }
   0x2   :  { %7 = vsyncpa [#allocation3], 0  ;;  %v212_v1 = vmov 0   ;;  %v20_v2 = vlaneseq  ;;  %v12_v6 = vld [vmem:[%s254_s0] sm:$0xff]  ;;  %v213_v62 = vmov 1   ;;  %v214_v63 = vmov 2  }
   0x3   :  { %166 = vset.pattern.permute.xlu0 %v212_v1  ;;  %167 = vset.pattern.permute.xlu1 %v213_v62  ;;  %s215_s0 = smov [#allocation2]  }
   0x4   :  { %16 = vperm.xlu0 %166, %v234_v0   ;;  %v21_v3 = vshrl.u32 %v20_v2, 7  ;;  %s154_s1 = sshll.u32 %s215_s0, 4  ;;  %s155_s1 = int_to_ptr.vmem [resolvable:$true] %s154_s1 }
   0x5   :  { %s188_s13 = scalar_lea.vmem %s155_s1, 1024  ;;  %p193_p1 = scmp.lt.s32.totalorder %s155_s1, %s155_s1 }
   0x6   :  { %v22_v4 = vsub.s32 0, %v21_v3  ;;  %v26_v5 = vsub.s32 1, %v21_v3  ;;  %v30_v7 = vsub.s32 2, %v21_v3  ;;  %v34_v10 = vsub.s32 3, %v21_v3  ;;  %p189_p0 = scmp.ne.s32.totalorder %s155_s1, %s188_s13  ;;  %p194_p2 = scmp.lt.s32.totalorder %s188_s13, %s188_s13 }
   0x7   :  { %v38_v12 = vsub.s32 4, %v21_v3  ;;  %v42_v15 = vsub.s32 5, %v21_v3  ;;  %v46_v19 = vsub.s32 6, %v21_v3  ;;  %v50_v23 = vsub.s32 7, %v21_v3 }
   0x8   :  { %v23_v8 = vrot.slane %v12_v6, %v22_v4  ;;  %v27_v9 = vrot.slane %v12_v6, %v26_v5  ;;  %v31_v11 = vrot.slane %v12_v6, %v30_v7  ;;  %v35_v14 = vrot.slane %v12_v6, %v34_v10  ;;  %169 = vset.pattern.permute.xlu0 %v214_v63  ;;  %p195_p3 = por %p194_p2, %p193_p1 }
   0x9   :  { %v39_v18 = vrot.slane %v12_v6, %v38_v12  ;;  %v43_v22 = vrot.slane %v12_v6, %v42_v15  ;;  %v47_v26 = vrot.slane %v12_v6, %v46_v19  ;;  %v51_v29 = vrot.slane %v12_v6, %v50_v23 }
   0xa   :  { %p196_p4 = pnand %p195_p3, %p189_p0 }
  0x83   :  { %v17_v13 = vpop.permute.xlu0 %16 }
  0x84   :  { %v60_v16 = vmul.f32 %v23_v8, %v17_v13  ;;  %v61_v17 = vmul.f32 %v27_v9, %v17_v13  ;;  %v62_v20 = vmul.f32 %v31_v11, %v17_v13  ;;  %v63_v24 = vmul.f32 %v35_v14, %v17_v13 }
  0x85   :  { %v64_v27 = vmul.f32 %v39_v18, %v17_v13  ;;  %v65_v30 = vmul.f32 %v43_v22, %v17_v13  ;;  %v66_v32 = vmul.f32 %v47_v26, %v17_v13  ;;  %v67_v34 = vmul.f32 %v51_v29, %v17_v13 }
  0x86   :  { %v68_v21 = vadd.f32 %v61_v17, %v60_v16 }
  0x88   :  { %v69_v25 = vadd.f32 %v68_v21, %v62_v20 }
  0x8a   :  { %v70_v28 = vadd.f32 %v69_v25, %v63_v24 }
  0x8c   :  { %v71_v31 = vadd.f32 %v70_v28, %v64_v27 }
  0x8e   :  { %v72_v33 = vadd.f32 %v71_v31, %v65_v30 }
  0x90   :  { %v73_v35 = vadd.f32 %v72_v33, %v66_v32 }
  0x92   :  { %v74_v36 = vadd.f32 %v73_v35, %v67_v34 }
  0x94   :  { %75 = vadd.xlane.f32.xlu0 %v74_v36 }
 0x121   :  { %v76_v37 = vpop.xlane.xlu0 %75 }
 0x122   :  { %v77_v38 = vmul.f32 0.0009765625, %v76_v37 }
 0x124   :  { %v78_v39 = vsub.f32 %v60_v16, %v77_v38  ;;  %v79_v40 = vsub.f32 %v61_v17, %v77_v38  ;;  %v80_v41 = vsub.f32 %v62_v20, %v77_v38  ;;  %v81_v42 = vsub.f32 %v63_v24, %v77_v38 }
 0x125   :  { %v82_v45 = vsub.f32 %v64_v27, %v77_v38  ;;  %v83_v48 = vsub.f32 %v65_v30, %v77_v38  ;;  %v84_v51 = vsub.f32 %v66_v32, %v77_v38  ;;  %v85_v54 = vsub.f32 %v67_v34, %v77_v38 }
 0x126   :  { %v86_v43 = vmul.f32 %v78_v39, %v78_v39  ;;  %v87_v44 = vmul.f32 %v79_v40, %v79_v40  ;;  %v88_v46 = vmul.f32 %v80_v41, %v80_v41  ;;  %v89_v49 = vmul.f32 %v81_v42, %v81_v42 }
 0x127   :  { %v90_v52 = vmul.f32 %v82_v45, %v82_v45  ;;  %v91_v55 = vmul.f32 %v83_v48, %v83_v48  ;;  %v92_v57 = vmul.f32 %v84_v51, %v84_v51  ;;  %v93_v59 = vmul.f32 %v85_v54, %v85_v54 }
 0x128   :  { %v94_v47 = vadd.f32 %v87_v44, %v86_v43 }
 0x12a   :  { %v95_v50 = vadd.f32 %v94_v47, %v88_v46 }
 0x12c   :  { %v96_v53 = vadd.f32 %v95_v50, %v89_v49 }
 0x12e   :  { %v97_v56 = vadd.f32 %v96_v53, %v90_v52 }
 0x130   :  { %v98_v58 = vadd.f32 %v97_v56, %v91_v55 }
 0x132   :  { %v99_v60 = vadd.f32 %v98_v58, %v92_v57 }
 0x134   :  { %v100_v61 = vadd.f32 %v99_v60, %v93_v59 }
 0x136   :  { %101 = vadd.xlane.f32.xlu1 %v100_v61 }
 0x1c3   :  { %v102_v1 = vpop.xlane.xlu1 %101 }
 0x1c4   :  { %v103_v2 = vmul.f32 0.0009765625, %v102_v1 }
 0x1c6   :  { %v104_v3 = vadd.f32 1e-05, %v103_v2 }
 0x1c8   :  { %170 = vrsqrt.f32 %v104_v3 }
 0x1d2   :  { %v171_v4 = vpop.eup %170 }
 0x1d3   :  { %v106_v5 = vmul.f32 %v171_v4, %v234_v0 }
 0x1d5   :  { %109 = vperm.xlu1 %167, %v106_v5  }
 0x1d9   :  { %168 = vset.pattern.permute.xlu1 %v214_v63 }
 0x1da   :  { %121 = vperm.xlu1 %168, %v234_v0  }
 0x254   :  { %v110_v6 = vpop.permute.xlu1 %109 }
 0x255   :  { %v112_v7 = vmul.f32 %v110_v6, %v78_v39  ;;  %v113_v8 = vmul.f32 %v110_v6, %v79_v40  ;;  %v114_v9 = vmul.f32 %v110_v6, %v80_v41  ;;  %v115_v10 = vmul.f32 %v110_v6, %v81_v42 }
 0x256   :  { %v116_v12 = vmul.f32 %v110_v6, %v82_v45  ;;  %v117_v16 = vmul.f32 %v110_v6, %v83_v48  ;;  %v118_v18 = vmul.f32 %v110_v6, %v84_v51  ;;  %v119_v20 = vmul.f32 %v110_v6, %v85_v54 }
 0x259   :  { %v122_v11 = vpop.permute.xlu1 %121 }
 0x25a   :  { %v124_v13 = vadd.f32 %v122_v11, %v112_v7  ;;  %v125_v14 = vadd.f32 %v122_v11, %v113_v8  ;;  %v126_v15 = vadd.f32 %v122_v11, %v114_v9  ;;  %v127_v17 = vadd.f32 %v122_v11, %v115_v10 }
 0x25b   :  { %v128_v19 = vadd.f32 %v122_v11, %v116_v12  ;;  %v129_v21 = vadd.f32 %v122_v11, %v117_v16  ;;  %v130_v22 = vadd.f32 %v122_v11, %v118_v18  ;;  %v131_v0 = vadd.f32 %v122_v11, %v119_v20 }
 0x25c   :  { %172 = vtanh.f32 %v124_v13 }
 0x25d   :  { %174 = vtanh.f32 %v125_v14 }
 0x25e   :  { %176 = vtanh.f32 %v126_v15 }
 0x25f   :  { %178 = vtanh.f32 %v127_v17 }
 0x260   :  { %180 = vtanh.f32 %v128_v19 }
 0x261   :  { %182 = vtanh.f32 %v129_v21 }
 0x262   :  { %184 = vtanh.f32 %v130_v22 }
 0x263   :  { %186 = vtanh.f32 %v131_v0 }
 0x266   :  { %v173_v23 = vpop.eup %172 }
 0x267   :  { %v175_v24 = vpop.eup %174  ;;  %140 = vst [vmem:[#allocation2] sm:$0xff] %v173_v23 }
 0x268   :  { %v177_v25 = vpop.eup %176  ;;  %141 = vst [vmem:[#allocation2 + $0x8] sm:$0xff] %v175_v24 }
 0x269   :  { %v179_v26 = vpop.eup %178  ;;  %142 = vst [vmem:[#allocation2 + $0x10] sm:$0xff] %v177_v25 }
 0x26a   :  { %v181_v27 = vpop.eup %180  ;;  %143 = vst [vmem:[#allocation2 + $0x18] sm:$0xff] %v179_v26 }
 0x26b   :  { %v183_v28 = vpop.eup %182  ;;  %144 = vst [vmem:[#allocation2 + $0x20] sm:$0xff] %v181_v27 }
 0x26c   :  { %v185_v29 = vpop.eup %184  ;;  %145 = vst [vmem:[#allocation2 + $0x28] sm:$0xff] %v183_v28 }
 0x26d   :  { %v187_v30 = vpop.eup %186  ;;  %146 = vst [vmem:[#allocation2 + $0x30] sm:$0xff] %v185_v29 }
 0x26e   :  { %147 = vst [vmem:[#allocation2 + $0x38] sm:$0xff] %v187_v30 }
 0x26f   :  { %199 = shalt.err (!%p196_p4)
}
 0x270   :  { %s200_s16 = scalar_lea.hbm %s256_s2, 1024 }
 0x271   :  { %p201_p5 = scmp.ne.s32.totalorder %s256_s2, %s200_s16  ;;  %p204_p6 = scmp.lt.u32.totalorder %s200_s16, %s256_s2 }
 0x273   :  { %p206_p7 = pnand %p204_p6, %p201_p5 }
 0x275   :  { %209 = shalt.err (!%p206_p7)
}
 0x276   :  { %157 = dma.vmem_to_hbm [thread:$0]  %s155_s1, 1024, %s256_s2, [#allocation3]  }
 0x277   :  { %210 = dma.done.wait [#allocation3], 1024  }
 0x278   :  { %211 = vsyncadd [#allocation3], 4294966272 }
 0x279   :  { %161 = vsyncpa [#allocation3], 1 }

</bundles_post_ra>
